<compile_context>
chip_gen: v7x
topology: tpu7x:2x2x1
jax: 0.10.0
libtpu: 0.0.40
codegen_flags: <defaults>
</compile_context>

<pallas_src>
import functools

import jax
import jax.numpy as jnp
from jax.experimental import pallas as pl
from jax.experimental.pallas import tpu as pltpu

EPS = 1e-5
_STATS_SPLIT = 2                    # leading "parallel" axis for megacore
_VMEM_LIMIT = 32 * 1024 * 1024


def _cdiv(a, b):
    return -(-a // b)


def _round_up(x, m):
    return _cdiv(x, m) * m


# ----------------------------- Pass 1: batch statistics ---------------------

def _stats_kernel(x_ref, sum_ref, sq_ref, *, tile_n, n_rows, inner_tiles,
                  mask_rows):
    """Accumulate per-feature (8-sublane-slab) sum and sum-of-squares."""
    @pl.when(pl.program_id(1) == 0)
    def _init():
        sum_ref[...] = jnp.zeros_like(sum_ref)
        sq_ref[...] = jnp.zeros_like(sq_ref)

    x = x_ref[...].astype(jnp.float32)                      # [tile_n, F]
    if mask_rows:
        # Ragged last tile / phantom tiles (index_map clamped): zero rows >= N.
        row0 = (pl.program_id(0) * inner_tiles + pl.program_id(1)) * tile_n
        rows = row0 + jax.lax.broadcasted_iota(jnp.int32, (tile_n, 1), 0)
        x = jnp.where(rows < n_rows, x, 0.0)

    # Keep 8 sublane partials (no cross-sublane reduce inside the kernel);
    # the final 8->1 reduce is a tiny XLA op outside.
    x3 = x.reshape(-1, 8, x.shape[-1])                       # [tile_n//8, 8, F]
    sum_ref[...] += jnp.sum(x3, axis=0)                      # [8, F]
    sq_ref[...] += jnp.sum(x3 * x3, axis=0)                  # [8, F]


def _batch_stats(x, tile_n):
    N, F = x.shape
    n_tiles = _cdiv(N, tile_n)
    inner = _cdiv(n_tiles, _STATS_SPLIT)
    mask_rows = (N % tile_n != 0) or (inner * _STATS_SPLIT != n_tiles)

    kernel = functools.partial(_stats_kernel, tile_n=tile_n, n_rows=N,
                               inner_tiles=inner, mask_rows=mask_rows)

    flops = 3 * N * F
    bytes_accessed = int(N * F * x.dtype.itemsize
                         + 2 * 8 * _STATS_SPLIT * F * 4)

    psum, psq = pl.pallas_call(
        kernel,
        out_shape=(jax.ShapeDtypeStruct((8 * _STATS_SPLIT, F), jnp.float32),
                   jax.ShapeDtypeStruct((8 * _STATS_SPLIT, F), jnp.float32)),
        grid_spec=pltpu.PrefetchScalarGridSpec(
            num_scalar_prefetch=0,
            grid=(_STATS_SPLIT, inner),
            in_specs=[pl.BlockSpec(
                (tile_n, F),
                # Clamp so phantom tiles (odd split) stay in bounds; their
                # rows are zeroed by the in-kernel mask.
                lambda c, i: (jnp.minimum(c * inner + i, n_tiles - 1), 0))],
            out_specs=[pl.BlockSpec((8, F), lambda c, i: (c, 0)),
                       pl.BlockSpec((8, F), lambda c, i: (c, 0))],
        ),
        compiler_params=pltpu.CompilerParams(
            dimension_semantics=("parallel", "arbitrary"),
            vmem_limit_bytes=_VMEM_LIMIT,
        ),
        cost_estimate=pl.CostEstimate(flops=flops, transcendentals=0,
                                      bytes_accessed=bytes_accessed),
    )(x)
    return (jnp.sum(psum, axis=0, keepdims=True),
            jnp.sum(psq, axis=0, keepdims=True))


# ----------------------- Pass 2: lane-dense tiled matmul --------------------

def _matmul_bias_kernel(x_ref, w_ref, b_ref, o_ref):
    # MXU consumes raw x in its native dtype; accumulate in f32.
    y = jnp.dot(x_ref[...], w_ref[...], preferred_element_type=jnp.float32)
    o_ref[...] = (y + b_ref[...]).astype(o_ref.dtype)


def _linear(x, w_eff, b_eff, tile_n, out_dtype):
    N, F = x.shape
    Kp = w_eff.shape[1]
    n_tiles = _cdiv(N, tile_n)
    flops = 2 * N * F * Kp
    bytes_accessed = int(N * F * x.dtype.itemsize
                         + F * Kp * w_eff.dtype.itemsize
                         + Kp * 4
                         + N * Kp * jnp.dtype(out_dtype).itemsize)
    return pl.pallas_call(
        _matmul_bias_kernel,
        out_shape=jax.ShapeDtypeStruct((N, Kp), out_dtype),
        grid_spec=pltpu.PrefetchScalarGridSpec(
            num_scalar_prefetch=0,
            grid=(n_tiles,),
            in_specs=[pl.BlockSpec((tile_n, F), lambda i: (i, 0)),
                      pl.BlockSpec((F, Kp), lambda i: (0, 0)),   # resident
                      pl.BlockSpec((1, Kp), lambda i: (0, 0))],  # resident
            out_specs=pl.BlockSpec((tile_n, Kp), lambda i: (i, 0)),
        ),
        compiler_params=pltpu.CompilerParams(
            # Independent N-tiles: shard across the 2 TensorCores on v7x.
            dimension_semantics=("parallel",),
            vmem_limit_bytes=_VMEM_LIMIT,
        ),
        cost_estimate=pl.CostEstimate(flops=flops, transcendentals=0,
                                      bytes_accessed=bytes_accessed),
    )(x, w_eff, b_eff)


# --------------------------------- Wrapper ----------------------------------

@functools.partial(jax.jit, static_argnames=("tile_n",))
def prebn_forward(x, gamma, beta, w, b, *, tile_n=512):
    """y = Linear(BatchNorm1d(x)) with current-batch statistics (PreBN)."""
    # TODO(synk): generic wrapped module `m` — implemented here as the usual
    # Linear classifier head; other `m` would need their own kernels.
    N, F = x.shape
    K = w.shape[1]

    gamma32 = gamma.reshape(1, F).astype(jnp.float32)
    beta32 = beta.reshape(1, F).astype(jnp.float32)
    w32 = w.astype(jnp.float32)
    b32 = b.reshape(1, K).astype(jnp.float32)

    # N-tile: multiple of 8 (sublane), clamped for tiny batches.
    tile_n = min(tile_n, _round_up(N, 8))
    # Lane-dense output: pad K to a multiple of 128 so stores are unmasked
    # full-lane vst; padded columns are zero and sliced off at the end.
    Kp = _round_up(K, 128)

    # ---- pass 1: per-feature batch statistics (single fused sweep) ----
    fsum, fsq = _batch_stats(x, tile_n)
    inv_n = jnp.float32(1.0 / N)
    mean = fsum * inv_n                                     # [1, F] f32
    var = jnp.maximum(fsq * inv_n - mean * mean, 0.0)       # biased variance
    inv_std = jax.lax.rsqrt(var + EPS)

    # ---- fold BN (normalize + affine) into the linear head ----
    #  y = ((x - mean) * inv_std * gamma + beta) @ W + b
    #    =  x @ (s * W) + ((beta - mean * s) @ W + b),   s = inv_std * gamma
    s = inv_std * gamma32                                   # [1, F]
    w_eff = (w32 * s.reshape(F, 1)).astype(x.dtype)         # [F, K] in x dtype
    b_eff = (beta32 - mean * s) @ w32 + b32                 # [1, K] f32

    if Kp != K:
        w_eff = jnp.pad(w_eff, ((0, 0), (0, Kp - K)))
        b_eff = jnp.pad(b_eff, ((0, 0), (0, Kp - K)))

    # ---- pass 2: lane-dense tiled matmul on raw x ----
    y = _linear(x, w_eff, b_eff, tile_n, x.dtype)
    return y[:, :K]


def _reference(x, gamma, beta, w, b):
    xf = x.astype(jnp.float32)
    mean = jnp.mean(xf, axis=0, keepdims=True)
    var = jnp.mean((xf - mean) ** 2, axis=0, keepdims=True)
    xn = (xf - mean) / jnp.sqrt(var + EPS) * gamma + beta
    return xn @ w.astype(jnp.float32) + b.astype(jnp.float32)


if __name__ == "__main__":
    key = jax.random.PRNGKey(0)
    N, F, K = 8, 32, 16   # batch, num_features, num_classes

    k_x, k_g, k_be, k_w, k_b = jax.random.split(key, 5)
    x = jax.random.normal(k_x, (N, F), dtype=jnp.float32)

    # BatchNorm1d affine params (perturb from the 1/0 init so the fold is
    # actually exercised).
    gamma = 1.0 + 0.1 * jax.random.normal(k_g, (1, F), dtype=jnp.float32)
    beta = 0.1 * jax.random.normal(k_be, (1, F), dtype=jnp.float32)

    # Linear head params, deterministic synthetic init (PyTorch-style bound).
    bound = 1.0 / jnp.sqrt(F)
    w = jax.random.uniform(k_w, (F, K), minval=-bound, maxval=bound,
                           dtype=jnp.float32)
    b = jax.random.uniform(k_b, (1, K), minval=-bound, maxval=bound,
                           dtype=jnp.float32)

    out = prebn_forward(x, gamma, beta, w, b)
    out = jax.block_until_ready(out)

    ref = _reference(x, gamma, beta, w, b)
    assert out.shape == (N, K)
    assert jnp.allclose(out, ref, atol=1e-4, rtol=1e-4), "mismatch vs reference"

    print("KERNEL_OK")
</pallas_src>

<mosaic_0001>
module attributes {stable_mosaic.version = 11 : i64} {
  func.func @_stats_kernel(%arg0: i32, %arg1: i32, %arg2: memref<8x32xf32, #tpu.memory_space<vmem>>, %arg3: memref<8x32xf32, #tpu.memory_space<vmem>>, %arg4: memref<8x32xf32, #tpu.memory_space<vmem>>) attributes {dimension_semantics = [#tpu.dimension_semantics<parallel>, #tpu.dimension_semantics<arbitrary>], iteration_bounds = array<i64: 2, 1>, scalar_prefetch = 0 : i64, scratch_operands = 0 : i64, tpu.core_type = #tpu.core_type<tc>, window_params = [{transform_indices = @transform_0, window_bounds = array<i64: 8, 32>}, {transform_indices = @transform_1, window_bounds = array<i64: 8, 32>}, {transform_indices = @transform_2, window_bounds = array<i64: 8, 32>}]} {
    %c0_i32 = arith.constant 0 : i32
    %0 = arith.cmpi eq, %arg1, %c0_i32 : i32
    %1 = arith.extui %0 : i1 to i32
    %c0_i32_0 = arith.constant 0 : i32
    %2 = arith.cmpi ne, %1, %c0_i32_0 : i32
    scf.if %2 {
      %cst_13 = arith.constant 0.000000e+00 : f32
      %26 = vector.broadcast %cst_13 : f32 to vector<8x32xf32>
      %c0_14 = arith.constant 0 : index
      %c0_15 = arith.constant 0 : index
      %27 = vector.load %arg3[%c0_14, %c0_15] : memref<8x32xf32, #tpu.memory_space<vmem>>, vector<8x32xf32>
      tpu.vector_store %arg3[%c0_14, %c0_15], %26 {strides = array<i32>} : memref<8x32xf32, #tpu.memory_space<vmem>>, vector<8x32xf32>,
      %cst_16 = arith.constant 0.000000e+00 : f32
      %28 = vector.broadcast %cst_16 : f32 to vector<8x32xf32>
      %c0_17 = arith.constant 0 : index
      %c0_18 = arith.constant 0 : index
      %29 = vector.load %arg4[%c0_17, %c0_18] : memref<8x32xf32, #tpu.memory_space<vmem>>, vector<8x32xf32>
      tpu.vector_store %arg4[%c0_17, %c0_18], %28 {strides = array<i32>} : memref<8x32xf32, #tpu.memory_space<vmem>>, vector<8x32xf32>,
    } else {
    }
    %c0 = arith.constant 0 : index
    %c0_1 = arith.constant 0 : index
    %3 = vector.load %arg2[%c0, %c0_1] : memref<8x32xf32, #tpu.memory_space<vmem>>, vector<8x32xf32>
    %c1_i32 = arith.constant 1 : i32
    %4 = arith.muli %arg0, %c1_i32 : i32
    %5 = arith.addi %4, %arg1 : i32
    %c8_i32 = arith.constant 8 : i32
    %6 = arith.muli %5, %c8_i32 : i32
    %7 = tpu.iota {dimensions = array<i32: 0>} : vector<8x1xi32>
    %8 = vector.broadcast %6 : i32 to vector<8x1xi32>
    %9 = arith.addi %8, %7 : vector<8x1xi32>
    %c8_i32_2 = arith.constant 8 : i32
    %10 = vector.broadcast %c8_i32_2 : i32 to vector<8x1xi32>
    %11 = arith.cmpi slt, %9, %10 : vector<8x1xi32>
    %cst = arith.constant 0.000000e+00 : f32
    %12 = vector.shape_cast %11 : vector<8x1xi1> to vector<8x1xi1>
    %13 = vector.broadcast %12 : vector<8x1xi1> to vector<8x32xi1>
    %14 = vector.broadcast %cst : f32 to vector<8x32xf32>
    %15 = arith.select %13, %3, %14 : vector<8x32xi1>, vector<8x32xf32>
    %16 = vector.shape_cast %15 : vector<8x32xf32> to vector<1x8x32xf32>
    %c0_3 = arith.constant 0 : index
    %c0_4 = arith.constant 0 : index
    %17 = vector.load %arg3[%c0_3, %c0_4] : memref<8x32xf32, #tpu.memory_space<vmem>>, vector<8x32xf32>
    %cst_5 = arith.constant dense<0.000000e+00> : vector<8x32xf32>
    %18 = vector.multi_reduction <add>, %16, %cst_5 [0] : vector<1x8x32xf32> to vector<8x32xf32>
    %19 = arith.addf %17, %18 : vector<8x32xf32>
    %c0_6 = arith.constant 0 : index
    %c0_7 = arith.constant 0 : index
    %20 = vector.load %arg3[%c0_6, %c0_7] : memref<8x32xf32, #tpu.memory_space<vmem>>, vector<8x32xf32>
    tpu.vector_store %arg3[%c0_6, %c0_7], %19 {strides = array<i32>} : memref<8x32xf32, #tpu.memory_space<vmem>>, vector<8x32xf32>,
    %c0_8 = arith.constant 0 : index
    %c0_9 = arith.constant 0 : index
    %21 = vector.load %arg4[%c0_8, %c0_9] : memref<8x32xf32, #tpu.memory_space<vmem>>, vector<8x32xf32>
    %22 = arith.mulf %16, %16 : vector<1x8x32xf32>
    %cst_10 = arith.constant dense<0.000000e+00> : vector<8x32xf32>
    %23 = vector.multi_reduction <add>, %22, %cst_10 [0] : vector<1x8x32xf32> to vector<8x32xf32>
    %24 = arith.addf %21, %23 : vector<8x32xf32>
    %c0_11 = arith.constant 0 : index
    %c0_12 = arith.constant 0 : index
    %25 = vector.load %arg4[%c0_11, %c0_12] : memref<8x32xf32, #tpu.memory_space<vmem>>, vector<8x32xf32>
    tpu.vector_store %arg4[%c0_11, %c0_12], %24 {strides = array<i32>} : memref<8x32xf32, #tpu.memory_space<vmem>>, vector<8x32xf32>,
    return
  }
  func.func @transform_0(%arg0: i32, %arg1: i32) -> (i32, i32) {
    %c1_i32 = arith.constant 1 : i32
    %0 = arith.muli %arg0, %c1_i32 : i32
    %1 = arith.addi %0, %arg1 : i32
    %c0_i32 = arith.constant 0 : i32
    %2 = arith.minsi %1, %c0_i32 : i32
    %c0_i32_0 = arith.constant 0 : i32
    %c0_i32_1 = arith.constant 0 : i32
    return %2, %c0_i32_0 : i32, i32
  }
  func.func @transform_1(%arg0: i32, %arg1: i32) -> (i32, i32) {
    %c0_i32 = arith.constant 0 : i32
    %c0_i32_0 = arith.constant 0 : i32
    return %arg0, %c0_i32 : i32, i32
  }
  func.func @transform_2(%arg0: i32, %arg1: i32) -> (i32, i32) {
    %c0_i32 = arith.constant 0 : i32
    %c0_i32_0 = arith.constant 0 : i32
    return %arg0, %c0_i32 : i32, i32
  }
}

module attributes {stable_mosaic.version = 11 : i64} {
  func.func @_matmul_bias_kernel(%arg0: i32, %arg1: memref<8x32xf32, #tpu.memory_space<vmem>>, %arg2: memref<32x128xf32, #tpu.memory_space<vmem>>, %arg3: memref<1x128xf32, #tpu.memory_space<vmem>>, %arg4: memref<8x128xf32, #tpu.memory_space<vmem>>) attributes {dimension_semantics = [#tpu.dimension_semantics<parallel>], iteration_bounds = array<i64: 1>, scalar_prefetch = 0 : i64, scratch_operands = 0 : i64, tpu.core_type = #tpu.core_type<tc>, window_params = [{transform_indices = @transform_0, window_bounds = array<i64: 8, 32>}, {pipeline_mode = #tpu.pipeline_mode<synchronous>, transform_indices = @transform_1, window_bounds = array<i64: 32, 128>}, {pipeline_mode = #tpu.pipeline_mode<synchronous>, transform_indices = @transform_2, window_bounds = array<i64: 1, 128>}, {transform_indices = @transform_3, window_bounds = array<i64: 8, 128>}]} {
    %c0 = arith.constant 0 : index
    %c0_0 = arith.constant 0 : index
    %0 = vector.load %arg1[%c0, %c0_0] : memref<8x32xf32, #tpu.memory_space<vmem>>, vector<8x32xf32>
    %c0_1 = arith.constant 0 : index
    %c0_2 = arith.constant 0 : index
    %1 = vector.load %arg2[%c0_1, %c0_2] : memref<32x128xf32, #tpu.memory_space<vmem>>, vector<32x128xf32>
    %cst = arith.constant dense<0.000000e+00> : vector<8x128xf32>
    %2 = tpu.matmul %0, %1, %cst {dimension_numbers = #tpu.dot_dimension_numbers<[1], [0], [0], [1], [0, 0, 1, 1], [], []>} : vector<8x32xf32>, vector<32x128xf32>, vector<8x128xf32> -> vector<8x128xf32>
    %c0_3 = arith.constant 0 : index
    %c0_4 = arith.constant 0 : index
    %3 = vector.load %arg3[%c0_3, %c0_4] : memref<1x128xf32, #tpu.memory_space<vmem>>, vector<1x128xf32>
    %4 = vector.broadcast %3 : vector<1x128xf32> to vector<8x128xf32>
    %5 = arith.addf %2, %4 : vector<8x128xf32>
    %c0_5 = arith.constant 0 : index
    %c0_6 = arith.constant 0 : index
    %6 = vector.load %arg4[%c0_5, %c0_6] : memref<8x128xf32, #tpu.memory_space<vmem>>, vector<8x128xf32>
    tpu.vector_store %arg4[%c0_5, %c0_6], %5 {strides = array<i32>} : memref<8x128xf32, #tpu.memory_space<vmem>>, vector<8x128xf32>,
    return
  }
  func.func @transform_0(%arg0: i32) -> (i32, i32) {
    %c0_i32 = arith.constant 0 : i32
    %c0_i32_0 = arith.constant 0 : i32
    return %arg0, %c0_i32 : i32, i32
  }
  func.func @transform_1(%arg0: i32) -> (i32, i32) {
    %c0_i32 = arith.constant 0 : i32
    %c0_i32_0 = arith.constant 0 : i32
    %c0_i32_1 = arith.constant 0 : i32
    return %c0_i32, %c0_i32_0 : i32, i32
  }
  func.func @transform_2(%arg0: i32) -> (i32, i32) {
    %c0_i32 = arith.constant 0 : i32
    %c0_i32_0 = arith.constant 0 : i32
    %c0_i32_1 = arith.constant 0 : i32
    return %c0_i32, %c0_i32_0 : i32, i32
  }
  func.func @transform_3(%arg0: i32) -> (i32, i32) {
    %c0_i32 = arith.constant 0 : i32
    %c0_i32_0 = arith.constant 0 : i32
    return %arg0, %c0_i32 : i32, i32
  }
}

</mosaic_0001>

<bundles_post_ra>
// kernel: prebn_forward.2
= control target key start
LH: loop header
LB: loop body
LE: loop exit
PB: predicated region body
PF: predicated region fallthrough
CT: control target
= control target key end

     0   :  { %s382_s9 = smov 0   ;;  %s384_s10 = smov 0   ;;  %s422_s0 = inlined_call_operand.vmem [shape: f32[8,32], index: 0, kind: input, shape index: {}]   ;;  %s423_s1 = inlined_call_operand.vmem [shape: f32[16,32], index: 1, kind: output, shape index: {0}]   ;;  %s424_s2 = inlined_call_operand.vmem [shape: f32[16,32], index: 2, kind: output, shape index: {1}]  }
   0x1   :  { %s386_s11 = smov 0  }
   0x2 LB: > { %s25_s12 = sadd.s32 1, %s360_s10  ;;  %p307_p0 = scmp.ge.s32.totalorder %s364_s11, 1  ;;  %s364_s11 = sphi %s386_s11, %s13_s11   ;;  %s360_s10 = sphi %s384_s10, %s426_s10   ;;  %s356_s9 = sphi %s382_s9, %s425_s9  }
   0x3   : > { %p27_p1 = scmp.ge.s32.totalorder %s25_s12, 2  ;;  %p138_p2 = scmp.lt.s32.totalorder %s364_s11, 3 }
   0x5   : > { %s428_s12 = smov (%p27_p1, %s25_s12), 0  ;;  %p139_p3 = pnand %p307_p0, %p138_p2 }
   0x6   : > { %p166_p4 = scmp.lt.s32.totalorder (!%p139_p3), %s356_s9, 0  ;;  %p175_p5 = scmp.lt.s32.totalorder (!%p139_p3), %s356_s9, 1  ;;  %v193_v0 = vlaneseq (!%p139_p3)  ;;  %vm187_vm0 = vcmask (!%p139_p3), 261120   ;;  %v366_v4 = vmov (!%p139_p3), 0.0  }
   0x7   : > { %142 = sbr.rel (%p139_p3) target bundleno = 30 (0x1e), region = 24  ;;  %s314_s13 = sshll.u32 (!%p139_p3), %s356_s9, 3 }
   0x8   : > { %v194_v1 = vshrl.u32 (!%p139_p3), %v193_v0, 7  ;;  %v195_v2 = vstv (!%p139_p3), %s314_s13 }
   0xa   : > { %v196_v3 = vadd.s32 (!%p139_p3), %v195_v2, %v194_v1 }
   0xc   : > { %vm197_vm1 = vcmp.lt.s32.totalorder (!%p139_p3), %v196_v3, 8 }
   0xe   : > { %s167_s14 = scalar_select %p166_p4, %s356_s9, 0 }
   0xf   : > { %s430_s9 = smov (!%p175_p5, %s356_s9), 1 }
  0x10   : > { %s432_s14 = smov (!%p166_p4, %s167_s14), 0  ;;  %s312_s15 = sshll.u32 %s430_s9, 3 }
  0x11   : > { %s311_s16 = sshll.u32 %s432_s14, 3  ;;  %s178_s19 = scalar_lea.vmem %s423_s1, %s312_s15 }
  0x12   : > { %s171_s22 = scalar_lea.vmem %s422_s0, %s311_s16  ;;  %188 = vst.msk [vmem:[%s178_s19] sm:$0xff] %vm187_vm0, %v366_v4  ;;  %s182_s25 = scalar_lea.vmem %s424_s2, %s312_s15 }
  0x13   : > { %v190_v5 = vld [vmem:[%s171_s22] sm:$0xff]  ;;  %189 = vst.msk [vmem:[%s182_s25] sm:$0xff] %vm187_vm0, %v366_v4 }
  0x14   : > { %v200_v6 = vsel %vm197_vm1, %v190_v5, 0.0 }
  0x15   : > { %v207_v7 = vmul.f32 %v200_v6, %v200_v6 }
  0x19   : > { %v201_v8 = vld [vmem:[%s178_s19] sm:$0xff] }
  0x1a   : > { %v203_v9 = vadd.f32 %v201_v8, %v200_v6  ;;  %v206_v10 = vld [vmem:[%s182_s25] sm:$0xff] }
  0x1b   : > { %v209_v11 = vadd.f32 %v207_v7, %v206_v10 }
  0x1c   : > { %205 = vst.msk [vmem:[%s178_s19] sm:$0xff] %vm187_vm0, %v203_v9 }
  0x1d   : > { %210 = vst.msk [vmem:[%s182_s25] sm:$0xff] %vm187_vm0, %v209_v11 }
  0x1e PF: > { %s13_s11 = sadd.s32 1, %s364_s11   ;;  %s425_s9 = smov %s360_s10 }
  0x1f   : > { %p10_p6 = scmp.ge.s32.totalorder %s13_s11, 4   ;;  %s426_s10 = smov %s428_s12 }
  0x21   :  { %12 = sbr.rel (!%p10_p6) target bundleno = 2 (0x2), region = 70 }

// kernel: prebn_forward.3
= control target key start
LH: loop header
LB: loop body
LE: loop exit
PB: predicated region body
PF: predicated region fallthrough
CT: control target
= control target key end

     0   :  { %v168_v3 = vmov 0.0|0.0   ;;  %vm169_vm0 = vmmov 0   ;;  %v170_v6 = vmov 0.0   ;;  %s222_s0 = inlined_call_operand.vmem [shape: f32[8,32], index: 0, kind: input, shape index: {}]   ;;  %s223_s1 = inlined_call_operand.vmem [shape: f32[32,128], index: 1, kind: input, shape index: {}]   ;;  %s224_s2 = inlined_call_operand.vmem [shape: f32[1,128], index: 2, kind: input, shape index: {}]   ;;  %s225_s3 = inlined_call_operand.hbm [shape: f32[8,128], index: 3, kind: output, shape index: {}]  }
   0x1   :  { %v16_v0 = vld [vmem:[%s223_s1] sm:$0xff]  ;;  %v17_v1 = vld [vmem:[%s223_s1 + $0x8] sm:$0xff]  ;;  %v18_v2 = vld [vmem:[%s223_s1 + $0x10] sm:$0xff]  ;;  %134 = vmatprep.subr.bf16.mxu0 %v168_v3  ;;  %131 = vmatprep.mubr.msk.f32.mxu0 %vm169_vm0, %v170_v6 }
   0x2   :  { %v135_v4 = vpack.c.bf16 %v17_v1, %v16_v0  ;;  %v19_v5 = vld [vmem:[%s223_s1 + $0x18] sm:$0xff] }
   0x3   :  { %8 = vsyncpa [#allocation3], 0  ;;  %v138_v7 = vpack.c.bf16 %v19_v5, %v18_v2  ;;  %v15_v8 = vld [vmem:[%s222_s0] sm:$0xff]  ;;  %vm27_vm1 = vcmask 261120   ;;  %s171_s24 = smov [#allocation2]  }
   0x4   :  { %136 = vmatpush3.bf16.msra.mxu0 %v135_v4  ;;  %v116_v9 = vld [vmem:[%s224_s2] ss:$0 sm:$0xff]  ;;  %s108_s1 = sshll.u32 %s171_s24, 4  ;;  %s109_s1 = int_to_ptr.vmem [resolvable:$true] %s108_s1 }
   0x5   :  { %137 = vmatprep.subr.bf16.mxu0 %v168_v3  ;;  %s144_s25 = scalar_lea.vmem %s109_s1, 128  ;;  %p149_p1 = scmp.lt.s32.totalorder %s109_s1, %s109_s1 }
   0x6   :  { %p145_p0 = scmp.ne.s32.totalorder %s109_s1, %s144_s25  ;;  %p150_p2 = scmp.lt.s32.totalorder %s144_s25, %s144_s25 }
   0x8   :  { %139 = vmatpush3.bf16.msra.mxu0 %v138_v7  ;;  %p151_p3 = por %p150_p2, %p149_p1 }
   0xa   :  { %p152_p4 = pnand %p151_p3, %p145_p0 }
   0xb   :  { %132 = vmatmul.mubr.msk.f32.vlgmr.msra.gmra.mrb[0].mxu0 %vm27_vm1, %v15_v8 }
  0xde   :  { %v97_v10 = vpop.f32.mrb[0].mxu0 }
  0xdf   :  { %v98_v11 = vadd.f32 %v116_v9, %v97_v10  ;;  %v133_v12 = vpop.f32.mrb[1].mxu0 }
  0xe1   :  { %101 = vst [vmem:[#allocation2] sm:$0xff] %v98_v11 }
  0xe2   :  { %155 = shalt.err (!%p152_p4)
}
  0xe3   :  { %s156_s27 = scalar_lea.hbm %s225_s3, 128 }
  0xe4   :  { %p157_p5 = scmp.ne.s32.totalorder %s225_s3, %s156_s27  ;;  %p160_p6 = scmp.lt.u32.totalorder %s156_s27, %s225_s3 }
  0xe6   :  { %p162_p7 = pnand %p160_p6, %p157_p5 }
  0xe8   :  { %165 = shalt.err (!%p162_p7)
}
  0xe9   :  { %111 = dma.vmem_to_hbm [thread:$0]  %s109_s1, 128, %s225_s3, [#allocation3]  }
  0xea   :  { %166 = dma.done.wait [#allocation3], 128  }
  0xeb   :  { %167 = vsyncadd [#allocation3], 4294967168 }
  0xec   :  { %115 = vsyncpa [#allocation3], 1 }

</bundles_post_ra>
